<compile_context>
chip_gen: v5e
topology: v5e:2x2
jax: 0.10.0
libtpu: 0.0.40
codegen_flags: <defaults>
</compile_context>

<pallas_src>
import jax
import jax.numpy as jnp
from jax.experimental import pallas as pl
from jax.experimental.pallas import tpu as pltpu


def _round_up(n, m):
    return (n + m - 1) // m * m


def _pad2(a, rows, cols):
    out = jnp.zeros((rows, cols), a.dtype)
    return out.at[: a.shape[0], : a.shape[1]].set(a)


def _keep_mask(shape, row_offset, seed, salt, keep_prob):
    """Boolean keep-mask from a stateless int32 hash of (seed, salt, row, col).

    Pure jnp integer ops (wrap-around mul, arithmetic shifts): identical results
    inside the Pallas kernel (TPU Mosaic or interpret mode) and in plain JAX on
    the host, so the reference can reproduce the in-kernel dropout exactly.
    """
    r = jax.lax.broadcasted_iota(jnp.int32, shape, 0) + row_offset
    c = jax.lax.broadcasted_iota(jnp.int32, shape, 1)
    h = r * jnp.int32(-1640531527) + c * jnp.int32(668265261) + jnp.int32(salt)
    h = h ^ (seed * jnp.int32(-1028477379))
    h = (h ^ (h >> 16)) * jnp.int32(2146095405)
    h = (h ^ (h >> 15)) * jnp.int32(-2073469301)
    h = h ^ (h >> 16)
    # integer-domain keep test: 23 uniform bits vs threshold (no f32 convert).
    thresh = jnp.int32(min(int(keep_prob * float(1 << 23)), 1 << 23))
    return (h & jnp.int32(0x7FFFFF)) < thresh


def _make_kernel(n_p, fin_p, h_p, fout_p, tile_m, keep, apply_dropout):
    bf16, f32 = jnp.bfloat16, jnp.float32

    def kernel(seed_ref, x_ref, adj_ref, w1_ref, b1_ref, w2_ref, b2_ref,
               out_ref, xd_ref, hd_ref):
        phase = pl.program_id(0)
        i = pl.program_id(1)

        # ---------------- phase 0: layer 1 -> dropout(hidden) into VMEM scratch ---
        @pl.when(phase == 0)
        def _layer1():
            # One-time: dropout(x) -> bf16, kept resident in VMEM scratch.
            @pl.when(i == 0)
            def _():
                xv = x_ref[...]
                if apply_dropout:
                    m = _keep_mask((n_p, fin_p), 0, seed_ref[0], 1, keep)
                    xv = jnp.where(m, xv * (1.0 / keep), 0.0)
                xd_ref[...] = xv.astype(bf16)

            # hidden tile = (adj_tile @ dropout(x)) @ W1 + b1
            t = jnp.dot(adj_ref[...], xd_ref[...], preferred_element_type=f32)
            hidden = jnp.dot(t.astype(bf16), w1_ref[...],
                             preferred_element_type=f32) + b1_ref[...]
            # NOTE: padded rows (>= n) pick up b1 here; harmless because adj's
            # padded columns are zero, so they never reach real outputs in phase 1.

            # Generator-level F.dropout followed by layer2's internal dropout,
            # fused into ONE Bernoulli(keep^2) draw scaled by 1/keep^2.
            if apply_dropout:
                m = _keep_mask((tile_m, h_p), i * tile_m, seed_ref[0], 2, keep * keep)
                hidden = jnp.where(m, hidden * (1.0 / (keep * keep)), 0.0)
            hd_ref[pl.ds(i * tile_m, tile_m), :] = hidden.astype(bf16)

        # ---------------- phase 1: layer 2 -> output row tile ---------------------
        @pl.when(phase == 1)
        def _layer2():
            t2 = jnp.dot(adj_ref[...], hd_ref[...], preferred_element_type=f32)
            out_ref[...] = jnp.dot(t2.astype(bf16), w2_ref[...],
                                   preferred_element_type=f32) + b2_ref[...]

    return kernel


def generator_z2g(x, adj, params, *, dropout=0.2, seed=0, training=True):
    """Fused Generator_z2g forward. Returns embeddings (n, fout), unpadded."""
    w1, b1, w2, b2 = params
    n, fin = x.shape
    h = w1.shape[1]
    fout = w2.shape[1]
    if not (0.0 <= dropout < 1.0):
        raise ValueError("dropout must be in [0, 1)")
    apply_dropout = bool(training) and dropout > 0.0
    keep = 1.0 - float(dropout)

    # ---- tiling / padding (lane axis -> x128, row axis -> x16 for bf16 packing) ----
    if n >= 2048:
        tile_m = 256                      # MXU M granule on v6e/v7x
    elif n >= 128:
        tile_m = 128
    else:
        tile_m = _round_up(max(n, 8), 16)
    n_p = _round_up(n, tile_m)
    fin_p = _round_up(fin, 128)
    h_p = _round_up(h, 128)
    fout_p = _round_up(fout, 128)
    n_t = n_p // tile_m

    f32 = jnp.float32
    x_p = _pad2(x.astype(f32), n_p, fin_p)                         # small, resident
    adj_p = _pad2(adj.astype(f32), n_p, n_p).astype(jnp.bfloat16)  # dominant stream
    w1_p = _pad2(w1.astype(f32), fin_p, h_p).astype(jnp.bfloat16)
    w2_p = _pad2(w2.astype(f32), h_p, fout_p).astype(jnp.bfloat16)
    b1_p = _pad2(b1.reshape(1, -1).astype(f32), 1, h_p)
    b2_p = _pad2(b2.reshape(1, -1).astype(f32), 1, fout_p)
    seed_arr = jnp.array([seed], dtype=jnp.int32)

    kernel = _make_kernel(n_p, fin_p, h_p, fout_p, tile_m, keep, apply_dropout)

    flops = (2 * n_p * n_p * fin_p + 2 * n_p * fin_p * h_p      # layer 1
             + 2 * n_p * n_p * h_p + 2 * n_p * h_p * fout_p)    # layer 2
    bytes_accessed = (2 * (2 * n_p * n_p)                       # adj bf16, once per phase
                      + 4 * n_p * fin_p                         # x f32
                      + 2 * (fin_p * h_p + h_p * fout_p)        # weights bf16
                      + 4 * (h_p + fout_p)                      # biases f32
                      + 4 * n_p * fout_p)                       # output f32
    ce = pl.CostEstimate(flops=flops, transcendentals=0,
                         bytes_accessed=bytes_accessed)

    resident = lambda r, c: pl.BlockSpec((r, c), lambda p, i, s: (0, 0))

    out_p = pl.pallas_call(
        kernel,
        out_shape=jax.ShapeDtypeStruct((n_p, fout_p), jnp.float32),
        grid_spec=pltpu.PrefetchScalarGridSpec(
            num_scalar_prefetch=1,                 # seed lands in SMEM
            grid=(2, n_t),                         # (phase, row tile)
            in_specs=[
                resident(n_p, fin_p),                                   # x (f32)
                pl.BlockSpec((tile_m, n_p), lambda p, i, s: (i, 0)),    # adj (bf16)
                resident(fin_p, h_p),                                   # W1 (bf16)
                resident(1, h_p),                                       # b1 (f32)
                resident(h_p, fout_p),                                  # W2 (bf16)
                resident(1, fout_p),                                    # b2 (f32)
            ],
            # p=0 -> block 0 stays resident (never written); p=1 -> row tile i.
            out_specs=pl.BlockSpec((tile_m, fout_p), lambda p, i, s: (p * i, 0)),
            scratch_shapes=[
                pltpu.VMEM((n_p, fin_p), jnp.bfloat16),   # dropout(x), bf16
                pltpu.VMEM((n_p, h_p), jnp.bfloat16),     # dropout(hidden), bf16
            ],
        ),
        compiler_params=pltpu.CompilerParams(
            dimension_semantics=("arbitrary", "arbitrary"),
            vmem_limit_bytes=64 * 1024 * 1024,
        ),
        cost_estimate=ce,
    )(seed_arr, x_p, adj_p, w1_p, b1_p, w2_p, b2_p)

    return out_p[:n, :fout]


def _uniform_init(key, shape, fan_in):
    # mimics GraphConvolution.reset_parameters: U(-1/sqrt(fan_in), 1/sqrt(fan_in))
    stdv = 1.0 / jnp.sqrt(jnp.float32(fan_in))
    return jax.random.uniform(key, shape, jnp.float32, minval=-stdv, maxval=stdv)


if __name__ == "__main__":
    # Small synthetic problem: N nodes, latent dim = hidden2, output dim = in_features.
    N, in_features, hidden1, hidden2 = 16, 16, 32, 8
    p = 0.2
    SEED = 0
    keep = 1.0 - p

    key = jax.random.PRNGKey(0)
    k_x, k_adj, k_w1, k_b1, k_w2, k_b2 = jax.random.split(key, 6)

    # latent codes z (N, hidden2)
    x = jax.random.normal(k_x, (N, hidden2), jnp.float32)

    # dense symmetric row-normalized adjacency with self-loops
    a = (jax.random.uniform(k_adj, (N, N)) < 0.3).astype(jnp.float32)
    adj = jnp.clip(a + a.T, 0.0, 1.0) + jnp.eye(N, dtype=jnp.float32)
    adj = adj / jnp.sum(adj, axis=1, keepdims=True)

    # layer1: (hidden2 -> hidden1), layer2: (hidden1 -> in_features)
    w1 = _uniform_init(k_w1, (hidden2, hidden1), hidden2)
    b1 = _uniform_init(k_b1, (hidden1,), hidden2)
    w2 = _uniform_init(k_w2, (hidden1, in_features), hidden1)
    b2 = _uniform_init(k_b2, (in_features,), hidden1)

    # ---- plain-JAX reference, reproducing the in-kernel masks and cast points ----
    def reference(apply_do):
        bf = lambda v: v.astype(jnp.bfloat16)
        xv = x
        if apply_do:
            m = _keep_mask((N, hidden2), 0, jnp.int32(SEED), 1, keep)
            xv = jnp.where(m, xv * (1.0 / keep), 0.0)
        adj_bf = bf(adj)
        t = jnp.dot(adj_bf, bf(xv), preferred_element_type=jnp.float32)
        hidden = jnp.dot(bf(t), bf(w1), preferred_element_type=jnp.float32) + b1
        if apply_do:
            m = _keep_mask((N, hidden1), 0, jnp.int32(SEED), 2, keep * keep)
            hidden = jnp.where(m, hidden * (1.0 / (keep * keep)), 0.0)
        t2 = jnp.dot(adj_bf, bf(hidden), preferred_element_type=jnp.float32)
        return jnp.dot(bf(t2), bf(w2), preferred_element_type=jnp.float32) + b2

    # training=True path (dropout active)
    emb = generator_z2g(x, adj, (w1, b1, w2, b2), dropout=p, seed=SEED, training=True)
    emb = jax.block_until_ready(emb)
    assert emb.shape == (N, in_features)
    assert bool(jnp.all(jnp.isfinite(emb)))
    ref_train = reference(True)
    assert bool(jnp.allclose(emb, ref_train, atol=2e-2, rtol=2e-2)), (
        float(jnp.max(jnp.abs(emb - ref_train))))

    # eval path (no dropout)
    emb_eval = generator_z2g(x, adj, (w1, b1, w2, b2), dropout=p, seed=SEED,
                             training=False)
    emb_eval = jax.block_until_ready(emb_eval)
    ref_eval = reference(False)
    assert bool(jnp.allclose(emb_eval, ref_eval, atol=2e-2, rtol=2e-2)), (
        float(jnp.max(jnp.abs(emb_eval - ref_eval))))

    print("KERNEL_OK")
</pallas_src>

<mosaic_0001>
module attributes {stable_mosaic.version = 11 : i64} {
  func.func @kernel(%arg0: i32, %arg1: i32, %arg2: memref<1xi32, #tpu.memory_space<smem>>, %arg3: memref<16x128xf32, #tpu.memory_space<vmem>>, %arg4: memref<16x16xbf16, #tpu.memory_space<vmem>>, %arg5: memref<128x128xbf16, #tpu.memory_space<vmem>>, %arg6: memref<1x128xf32, #tpu.memory_space<vmem>>, %arg7: memref<128x128xbf16, #tpu.memory_space<vmem>>, %arg8: memref<1x128xf32, #tpu.memory_space<vmem>>, %arg9: memref<16x128xf32, #tpu.memory_space<vmem>>, %arg10: memref<16x128xbf16, #tpu.memory_space<vmem>>, %arg11: memref<16x128xbf16, #tpu.memory_space<vmem>>) attributes {dimension_semantics = [#tpu.dimension_semantics<arbitrary>, #tpu.dimension_semantics<arbitrary>], iteration_bounds = array<i64: 2, 1>, scalar_prefetch = 1 : i64, scratch_operands = 2 : i64, tpu.core_type = #tpu.core_type<tc>, window_params = [{pipeline_mode = #tpu.pipeline_mode<synchronous>, transform_indices = @transform_0, window_bounds = array<i64: 16, 128>}, {transform_indices = @transform_1, window_bounds = array<i64: 16, 16>}, {pipeline_mode = #tpu.pipeline_mode<synchronous>, transform_indices = @transform_2, window_bounds = array<i64: 128, 128>}, {pipeline_mode = #tpu.pipeline_mode<synchronous>, transform_indices = @transform_3, window_bounds = array<i64: 1, 128>}, {pipeline_mode = #tpu.pipeline_mode<synchronous>, transform_indices = @transform_4, window_bounds = array<i64: 128, 128>}, {pipeline_mode = #tpu.pipeline_mode<synchronous>, transform_indices = @transform_5, window_bounds = array<i64: 1, 128>}, {transform_indices = @transform_6, window_bounds = array<i64: 16, 128>}]} {
    %c0_i32 = arith.constant 0 : i32
    %0 = arith.cmpi eq, %arg0, %c0_i32 : i32
    %1 = arith.extui %0 : i1 to i32
    %c0_i32_0 = arith.constant 0 : i32
    %2 = arith.cmpi ne, %1, %c0_i32_0 : i32
    scf.if %2 {
      %c0_i32_2 = arith.constant 0 : i32
      %6 = arith.cmpi eq, %arg1, %c0_i32_2 : i32
      %7 = arith.extui %6 : i1 to i32
      %c0_i32_3 = arith.constant 0 : i32
      %8 = arith.cmpi ne, %7, %c0_i32_3 : i32
      scf.if %8 {
        %c0_19 = arith.constant 0 : index
        %c0_20 = arith.constant 0 : index
        %59 = vector.load %arg3[%c0_19, %c0_20] : memref<16x128xf32, #tpu.memory_space<vmem>>, vector<16x128xf32>
        %c0_21 = arith.constant 0 : index
        %60 = memref.load %arg2[%c0_21] : memref<1xi32, #tpu.memory_space<smem>>
        %61 = tpu.iota {dimensions = array<i32: 0>} : vector<16x128xi32>
        %c0_i32_22 = arith.constant 0 : i32
        %62 = vector.broadcast %c0_i32_22 : i32 to vector<16x128xi32>
        %63 = arith.addi %61, %62 : vector<16x128xi32>
        %64 = tpu.iota {dimensions = array<i32: 1>} : vector<16x128xi32>
        %c-1640531527_i32_23 = arith.constant -1640531527 : i32
        %65 = vector.broadcast %c-1640531527_i32_23 : i32 to vector<16x128xi32>
        %66 = arith.muli %63, %65 : vector<16x128xi32>
        %c668265261_i32_24 = arith.constant 668265261 : i32
        %67 = vector.broadcast %c668265261_i32_24 : i32 to vector<16x128xi32>
        %68 = arith.muli %64, %67 : vector<16x128xi32>
        %69 = arith.addi %66, %68 : vector<16x128xi32>
        %c1_i32_25 = arith.constant 1 : i32
        %70 = vector.broadcast %c1_i32_25 : i32 to vector<16x128xi32>
        %71 = arith.addi %69, %70 : vector<16x128xi32>
        %c-1028477379_i32_26 = arith.constant -1028477379 : i32
        %72 = arith.muli %60, %c-1028477379_i32_26 : i32
        %73 = vector.broadcast %72 : i32 to vector<16x128xi32>
        %74 = arith.xori %71, %73 : vector<16x128xi32>
        %c16_i32_27 = arith.constant 16 : i32
        %75 = vector.broadcast %c16_i32_27 : i32 to vector<16x128xi32>
        %76 = arith.shrsi %74, %75 : vector<16x128xi32>
        %77 = arith.xori %74, %76 : vector<16x128xi32>
        %c2146095405_i32_28 = arith.constant 2146095405 : i32
        %78 = vector.broadcast %c2146095405_i32_28 : i32 to vector<16x128xi32>
        %79 = arith.muli %77, %78 : vector<16x128xi32>
        %c15_i32_29 = arith.constant 15 : i32
        %80 = vector.broadcast %c15_i32_29 : i32 to vector<16x128xi32>
        %81 = arith.shrsi %79, %80 : vector<16x128xi32>
        %82 = arith.xori %79, %81 : vector<16x128xi32>
        %c-2073469301_i32_30 = arith.constant -2073469301 : i32
        %83 = vector.broadcast %c-2073469301_i32_30 : i32 to vector<16x128xi32>
        %84 = arith.muli %82, %83 : vector<16x128xi32>
        %c16_i32_31 = arith.constant 16 : i32
        %85 = vector.broadcast %c16_i32_31 : i32 to vector<16x128xi32>
        %86 = arith.shrsi %84, %85 : vector<16x128xi32>
        %87 = arith.xori %84, %86 : vector<16x128xi32>
        %c8388607_i32_32 = arith.constant 8388607 : i32
        %88 = vector.broadcast %c8388607_i32_32 : i32 to vector<16x128xi32>
        %89 = arith.andi %87, %88 : vector<16x128xi32>
        %c6710886_i32 = arith.constant 6710886 : i32
        %90 = vector.broadcast %c6710886_i32 : i32 to vector<16x128xi32>
        %91 = arith.cmpi slt, %89, %90 : vector<16x128xi32>
        %cst_33 = arith.constant 1.250000e+00 : f32
        %92 = vector.broadcast %cst_33 : f32 to vector<16x128xf32>
        %93 = arith.mulf %59, %92 : vector<16x128xf32>
        %cst_34 = arith.constant 0.000000e+00 : f32
        %94 = vector.broadcast %cst_34 : f32 to vector<16x128xf32>
        %95 = arith.select %91, %93, %94 : vector<16x128xi1>, vector<16x128xf32>
        %96 = arith.truncf %95 : vector<16x128xf32> to vector<16x128xbf16>
        %c0_35 = arith.constant 0 : index
        %c0_36 = arith.constant 0 : index
        %97 = vector.load %arg10[%c0_35, %c0_36] : memref<16x128xbf16, #tpu.memory_space<vmem>>, vector<16x128xbf16>
        tpu.vector_store %arg10[%c0_35, %c0_36], %96 {strides = array<i32>} : memref<16x128xbf16, #tpu.memory_space<vmem>>, vector<16x128xbf16>,
      } else {
      }
      %c0 = arith.constant 0 : index
      %c0_4 = arith.constant 0 : index
      %9 = vector.load %arg4[%c0, %c0_4] : memref<16x16xbf16, #tpu.memory_space<vmem>>, vector<16x16xbf16>
      %c0_5 = arith.constant 0 : index
      %c0_6 = arith.constant 0 : index
      %10 = vector.load %arg10[%c0_5, %c0_6] : memref<16x128xbf16, #tpu.memory_space<vmem>>, vector<16x128xbf16>
      %cst = arith.constant dense<0.000000e+00> : vector<16x128xf32>
      %11 = tpu.matmul %9, %10, %cst {dimension_numbers = #tpu.dot_dimension_numbers<[1], [0], [0], [1], [0, 0, 1, 1], [], []>} : vector<16x16xbf16>, vector<16x128xbf16>, vector<16x128xf32> -> vector<16x128xf32>
      %12 = arith.truncf %11 : vector<16x128xf32> to vector<16x128xbf16>
      %c0_7 = arith.constant 0 : index
      %c0_8 = arith.constant 0 : index
      %13 = vector.load %arg5[%c0_7, %c0_8] : memref<128x128xbf16, #tpu.memory_space<vmem>>, vector<128x128xbf16>
      %cst_9 = arith.constant dense<0.000000e+00> : vector<16x128xf32>
      %14 = tpu.matmul %12, %13, %cst_9 {dimension_numbers = #tpu.dot_dimension_numbers<[1], [0], [0], [1], [0, 0, 1, 1], [], []>} : vector<16x128xbf16>, vector<128x128xbf16>, vector<16x128xf32> -> vector<16x128xf32>
      %c0_10 = arith.constant 0 : index
      %c0_11 = arith.constant 0 : index
      %15 = vector.load %arg6[%c0_10, %c0_11] : memref<1x128xf32, #tpu.memory_space<vmem>>, vector<1x128xf32>
      %16 = vector.broadcast %15 : vector<1x128xf32> to vector<16x128xf32>
      %17 = arith.addf %14, %16 : vector<16x128xf32>
      %c16_i32 = arith.constant 16 : i32
      %18 = arith.muli %arg1, %c16_i32 : i32
      %c0_12 = arith.constant 0 : index
      %19 = memref.load %arg2[%c0_12] : memref<1xi32, #tpu.memory_space<smem>>
      %20 = tpu.iota {dimensions = array<i32: 0>} : vector<16x128xi32>
      %21 = vector.broadcast %18 : i32 to vector<16x128xi32>
      %22 = arith.addi %20, %21 : vector<16x128xi32>
      %23 = tpu.iota {dimensions = array<i32: 1>} : vector<16x128xi32>
      %c-1640531527_i32 = arith.constant -1640531527 : i32
      %24 = vector.broadcast %c-1640531527_i32 : i32 to vector<16x128xi32>
      %25 = arith.muli %22, %24 : vector<16x128xi32>
      %c668265261_i32 = arith.constant 668265261 : i32
      %26 = vector.broadcast %c668265261_i32 : i32 to vector<16x128xi32>
      %27 = arith.muli %23, %26 : vector<16x128xi32>
      %28 = arith.addi %25, %27 : vector<16x128xi32>
      %c2_i32 = arith.constant 2 : i32
      %29 = vector.broadcast %c2_i32 : i32 to vector<16x128xi32>
      %30 = arith.addi %28, %29 : vector<16x128xi32>
      %c-1028477379_i32 = arith.constant -1028477379 : i32
      %31 = arith.muli %19, %c-1028477379_i32 : i32
      %32 = vector.broadcast %31 : i32 to vector<16x128xi32>
      %33 = arith.xori %30, %32 : vector<16x128xi32>
      %c16_i32_13 = arith.constant 16 : i32
      %34 = vector.broadcast %c16_i32_13 : i32 to vector<16x128xi32>
      %35 = arith.shrsi %33, %34 : vector<16x128xi32>
      %36 = arith.xori %33, %35 : vector<16x128xi32>
      %c2146095405_i32 = arith.constant 2146095405 : i32
      %37 = vector.broadcast %c2146095405_i32 : i32 to vector<16x128xi32>
      %38 = arith.muli %36, %37 : vector<16x128xi32>
      %c15_i32 = arith.constant 15 : i32
      %39 = vector.broadcast %c15_i32 : i32 to vector<16x128xi32>
      %40 = arith.shrsi %38, %39 : vector<16x128xi32>
      %41 = arith.xori %38, %40 : vector<16x128xi32>
      %c-2073469301_i32 = arith.constant -2073469301 : i32
      %42 = vector.broadcast %c-2073469301_i32 : i32 to vector<16x128xi32>
      %43 = arith.muli %41, %42 : vector<16x128xi32>
      %c16_i32_14 = arith.constant 16 : i32
      %44 = vector.broadcast %c16_i32_14 : i32 to vector<16x128xi32>
      %45 = arith.shrsi %43, %44 : vector<16x128xi32>
      %46 = arith.xori %43, %45 : vector<16x128xi32>
      %c8388607_i32 = arith.constant 8388607 : i32
      %47 = vector.broadcast %c8388607_i32 : i32 to vector<16x128xi32>
      %48 = arith.andi %46, %47 : vector<16x128xi32>
      %c5368709_i32 = arith.constant 5368709 : i32
      %49 = vector.broadcast %c5368709_i32 : i32 to vector<16x128xi32>
      %50 = arith.cmpi slt, %48, %49 : vector<16x128xi32>
      %cst_15 = arith.constant 1.562500e+00 : f32
      %51 = vector.broadcast %cst_15 : f32 to vector<16x128xf32>
      %52 = arith.mulf %17, %51 : vector<16x128xf32>
      %cst_16 = arith.constant 0.000000e+00 : f32
      %53 = vector.broadcast %cst_16 : f32 to vector<16x128xf32>
      %54 = arith.select %50, %52, %53 : vector<16x128xi1>, vector<16x128xf32>
      %55 = arith.truncf %54 : vector<16x128xf32> to vector<16x128xbf16>
      %c16_i32_17 = arith.constant 16 : i32
      %56 = arith.muli %arg1, %c16_i32_17 : i32
      %57 = arith.index_cast %56 : i32 to index
      %c0_18 = arith.constant 0 : index
      %58 = vector.load %arg11[%57, %c0_18] : memref<16x128xbf16, #tpu.memory_space<vmem>>, vector<16x128xbf16>
      tpu.vector_store %arg11[%57, %c0_18], %55 {strides = array<i32>} : memref<16x128xbf16, #tpu.memory_space<vmem>>, vector<16x128xbf16>,
    } else {
    }
    %c1_i32 = arith.constant 1 : i32
    %3 = arith.cmpi eq, %arg0, %c1_i32 : i32
    %4 = arith.extui %3 : i1 to i32
    %c0_i32_1 = arith.constant 0 : i32
    %5 = arith.cmpi ne, %4, %c0_i32_1 : i32
    scf.if %5 {
      %c0 = arith.constant 0 : index
      %c0_2 = arith.constant 0 : index
      %6 = vector.load %arg4[%c0, %c0_2] : memref<16x16xbf16, #tpu.memory_space<vmem>>, vector<16x16xbf16>
      %c0_3 = arith.constant 0 : index
      %c0_4 = arith.constant 0 : index
      %7 = vector.load %arg11[%c0_3, %c0_4] : memref<16x128xbf16, #tpu.memory_space<vmem>>, vector<16x128xbf16>
      %cst = arith.constant dense<0.000000e+00> : vector<16x128xf32>
      %8 = tpu.matmul %6, %7, %cst {dimension_numbers = #tpu.dot_dimension_numbers<[1], [0], [0], [1], [0, 0, 1, 1], [], []>} : vector<16x16xbf16>, vector<16x128xbf16>, vector<16x128xf32> -> vector<16x128xf32>
      %9 = arith.truncf %8 : vector<16x128xf32> to vector<16x128xbf16>
      %c0_5 = arith.constant 0 : index
      %c0_6 = arith.constant 0 : index
      %10 = vector.load %arg7[%c0_5, %c0_6] : memref<128x128xbf16, #tpu.memory_space<vmem>>, vector<128x128xbf16>
      %cst_7 = arith.constant dense<0.000000e+00> : vector<16x128xf32>
      %11 = tpu.matmul %9, %10, %cst_7 {dimension_numbers = #tpu.dot_dimension_numbers<[1], [0], [0], [1], [0, 0, 1, 1], [], []>} : vector<16x128xbf16>, vector<128x128xbf16>, vector<16x128xf32> -> vector<16x128xf32>
      %c0_8 = arith.constant 0 : index
      %c0_9 = arith.constant 0 : index
      %12 = vector.load %arg8[%c0_8, %c0_9] : memref<1x128xf32, #tpu.memory_space<vmem>>, vector<1x128xf32>
      %13 = vector.broadcast %12 : vector<1x128xf32> to vector<16x128xf32>
      %14 = arith.addf %11, %13 : vector<16x128xf32>
      %c0_10 = arith.constant 0 : index
      %c0_11 = arith.constant 0 : index
      %15 = vector.load %arg9[%c0_10, %c0_11] : memref<16x128xf32, #tpu.memory_space<vmem>>, vector<16x128xf32>
      tpu.vector_store %arg9[%c0_10, %c0_11], %14 {strides = array<i32>} : memref<16x128xf32, #tpu.memory_space<vmem>>, vector<16x128xf32>,
    } else {
    }
    return
  }
  func.func @transform_0(%arg0: i32, %arg1: i32, %arg2: memref<1xi32, #tpu.memory_space<smem>>) -> (i32, i32) {
    %c0_i32 = arith.constant 0 : i32
    %c0_i32_0 = arith.constant 0 : i32
    %c0_i32_1 = arith.constant 0 : i32
    return %c0_i32, %c0_i32_0 : i32, i32
  }
  func.func @transform_1(%arg0: i32, %arg1: i32, %arg2: memref<1xi32, #tpu.memory_space<smem>>) -> (i32, i32) {
    %c0_i32 = arith.constant 0 : i32
    %c0_i32_0 = arith.constant 0 : i32
    return %arg1, %c0_i32 : i32, i32
  }
  func.func @transform_2(%arg0: i32, %arg1: i32, %arg2: memref<1xi32, #tpu.memory_space<smem>>) -> (i32, i32) {
    %c0_i32 = arith.constant 0 : i32
    %c0_i32_0 = arith.constant 0 : i32
    %c0_i32_1 = arith.constant 0 : i32
    return %c0_i32, %c0_i32_0 : i32, i32
  }
  func.func @transform_3(%arg0: i32, %arg1: i32, %arg2: memref<1xi32, #tpu.memory_space<smem>>) -> (i32, i32) {
    %c0_i32 = arith.constant 0 : i32
    %c0_i32_0 = arith.constant 0 : i32
    %c0_i32_1 = arith.constant 0 : i32
    return %c0_i32, %c0_i32_0 : i32, i32
  }
  func.func @transform_4(%arg0: i32, %arg1: i32, %arg2: memref<1xi32, #tpu.memory_space<smem>>) -> (i32, i32) {
    %c0_i32 = arith.constant 0 : i32
    %c0_i32_0 = arith.constant 0 : i32
    %c0_i32_1 = arith.constant 0 : i32
    return %c0_i32, %c0_i32_0 : i32, i32
  }
  func.func @transform_5(%arg0: i32, %arg1: i32, %arg2: memref<1xi32, #tpu.memory_space<smem>>) -> (i32, i32) {
    %c0_i32 = arith.constant 0 : i32
    %c0_i32_0 = arith.constant 0 : i32
    %c0_i32_1 = arith.constant 0 : i32
    return %c0_i32, %c0_i32_0 : i32, i32
  }
  func.func @transform_6(%arg0: i32, %arg1: i32, %arg2: memref<1xi32, #tpu.memory_space<smem>>) -> (i32, i32) {
    %0 = arith.muli %arg0, %arg1 : i32
    %c0_i32 = arith.constant 0 : i32
    %c0_i32_0 = arith.constant 0 : i32
    return %0, %c0_i32 : i32, i32
  }
}

</mosaic_0001>

<bundles_post_ra>
// kernel: tpu_custom_call.1
= control target key start
LH: loop header
LB: loop body
LE: loop exit
PB: predicated region body
PF: predicated region fallthrough
CT: control target
= control target key end

     0   :  { %s1347_s0 = inlined_call_operand.<no memory space> [shape: s32[1], index: 0, kind: input, shape index: {}]   ;;  %s1348_s1 = inlined_call_operand.hbm [shape: f32[16,128], index: 1, kind: input, shape index: {}]   ;;  %s1349_s2 = inlined_call_operand.hbm [shape: bf16[16,16], index: 2, kind: input, shape index: {}]   ;;  %s1350_s3 = inlined_call_operand.hbm [shape: bf16[128,128], index: 3, kind: input, shape index: {}]   ;;  %s1351_s4 = inlined_call_operand.vmem [shape: f32[1,128], index: 4, kind: input, shape index: {}]   ;;  %s1352_s5 = inlined_call_operand.hbm [shape: bf16[128,128], index: 5, kind: input, shape index: {}]   ;;  %s1353_s6 = inlined_call_operand.vmem [shape: f32[1,128], index: 6, kind: input, shape index: {}]   ;;  %s1354_s7 = inlined_call_operand.hbm [shape: f32[16,128], index: 7, kind: output, shape index: {}]  }
   0x1   :  { %12 = sst [smem:[#allocation5]] %s1347_s0 }
   0x2   :  { %13 = vsyncpa [#allocation7], 0 }
   0x3   :  { %14 = vsyncpa [#allocation10], 0 }
   0x4   :  { %15 = vsyncpa [#allocation13], 0 }
   0x5   :  { %16 = vsyncpa [#allocation8], 0 }
   0x6   :  { %18 = vsyncpa [#allocation8 + $0x1], 0  ;;  %s1248_s26 = smov 0   ;;  %s1250_s27 = smov 0  }
   0x7   :  { %s1252_s28 = smov 0  }
   0x8 LB: > { %s228_s30 = sshll.u32 %s1349_s2, 4  ;;  %s791_s8 = sadd.s32 4294967295, %s1192_s28   ;;  %s1192_s28 = sphi %s1252_s28, %s24_s28   ;;  %s1188_s27 = sphi %s1250_s27, %s1360_s27   ;;  %s1184_s26 = sphi %s1248_s26, %s1359_s26   ;;  %s229_s30 = int_to_ptr.hbm [resolvable:$true] %s228_s30 }
   0x9   : > { %p793_p0 = scmp.ge.s32.totalorder %s1192_s28, 1  ;;  %p200_p1 = scmp.lt.s32.totalorder %s1192_s28, 3 }
   0xa   : > { %p1272_p2 = scmp.eq.s32.totalorder %s791_s8, 0  ;;  %s1194_s12 = smov [#allocation9]  }
   0xb   : > { %p1276_p3 = pnand %p793_p0, %p200_p1  ;;  %s230_s13 = sshll.u32 %s1194_s12, 4  ;;  %s231_s13 = int_to_ptr.vmem [resolvable:$true] %s230_s13 }
   0xc   : > { %s36_s15 = sadd.s32 1, %s1188_s27  ;;  %s1195_s16 = smov 64  }
   0xd   : > { %p941_p4 = pneg %p1276_p3  ;;  %s1196_s17 = smov 4  }
   0xe   : > { %p38_p6 = scmp.ge.s32.totalorder %s36_s15, 2  ;;  %s211_s20 = sshll.u32 %s1348_s1, 4  ;;  %s212_s20 = int_to_ptr.hbm [resolvable:$true] %s211_s20 }
   0xf   : > { %p1284_p5 = pnand %p1272_p2, %p941_p4  ;;  %s1197_s21 = smov [#allocation6]  }
  0x10   : > { %s1362_s15 = smov (%p38_p6, %s36_s15), 0  ;;  %s213_s22 = sshll.u32 %s1197_s21, 4  ;;  %s214_s22 = int_to_ptr.vmem [resolvable:$true] %s213_s22 }
  0x11   : > { %947 = dma.hbm_to_vmem [thread:$0]  (!%p1284_p5), %s229_s30, 128, %s231_s13, [#allocation10], %s1195_s16, %s1195_s16, %s1196_s17  }
  0x12   : > { %s1198_s23 = smov 128   ;;  %s1199_s24 = smov 8  }
  0x13   : > { %944 = dma.hbm_to_vmem [thread:$0]  (!%p1284_p5), %s212_s20, 256, %s214_s22, [#allocation7], %s1198_s23, %s1198_s23, %s1199_s24  }
  0x14   : > { %s242_s29 = sshll.u32 %s1350_s3, 4  ;;  %s1200_s30 = smov [#allocation11]   ;;  %s243_s29 = int_to_ptr.hbm [resolvable:$true] %s242_s29 }
  0x15   : > { %s244_s12 = sshll.u32 %s1200_s30, 4  ;;  %s259_s19 = sshll.u32 %s1352_s5, 4  ;;  %s245_s12 = int_to_ptr.vmem [resolvable:$true] %s244_s12  ;;  %s260_s19 = int_to_ptr.hbm [resolvable:$true] %s259_s19 }
  0x16   : > { %950 = dma.hbm_to_vmem [thread:$0]  (!%p1284_p5), %s243_s29, 1024, %s245_s12, [#allocation10], %s1195_s16, %s1195_s16, %s1196_s17  }
  0x17   : > { %s1201_s21 = smov [#allocation12]   ;;  %280 = sbr.rel (%p1276_p3) target bundleno = 653 (0x28d), region = 44 }
  0x18   : > { %s261_s9 = sshll.u32 %s1201_s21, 4  ;;  %s262_s9 = int_to_ptr.vmem [resolvable:$true] %s261_s9 }
  0x19   : > { %953 = dma.hbm_to_vmem [thread:$0]  (!%p1284_p5), %s260_s19, 1024, %s262_s9, [#allocation13], %s1195_s16, %s1195_s16, %s1196_s17  }
  0x1c   : > { %1167 = dma.done.wait (%p1272_p2), [#allocation7], 256  }
  0x1d   : > { %1169 = vsyncadd (%p1272_p2), [#allocation7], 4294967040 }
  0x1e   : > { %1171 = dma.done.wait (%p1272_p2), [#allocation10], 1152  }
  0x1f   : > { %1173 = vsyncadd (%p1272_p2), [#allocation10], 4294966144 }
  0x20   : > { %1175 = dma.done.wait (%p1272_p2), [#allocation13], 1024  }
  0x21   : > { %1177 = vsyncadd (%p1272_p2), [#allocation13], 4294966272  ;;  %p803_p7 = scmp.ne.s32.totalorder %s1184_s26, 0 }
  0x22   : > { %s335_s9 = sld [smem:[#allocation5]] (!%p803_p7) }
  0x23   : > { %328 = sbr.rel (%p803_p7) target bundleno = 365 (0x16d), region = 64 }
  0x28   : > { %v336_v0 = vlaneseq  ;;  %s348_s11 = smul.u32 3266489917, %s335_s9  ;;  %v900_v19 = vld [vmem:[#allocation11 + $0x38] sm:$0xff]  ;;  %v899_v22 = vld [vmem:[#allocation11 + $0x30] sm:$0xff]  ;;  %v898_v27 = vld [vmem:[#allocation11 + $0x28] sm:$0xff]  ;;  %vm395_vm2 = vcmask 130048  }
  0x29   : > { %482 = vmatpush.bf16.msra.mxu1 %v900_v19  ;;  %v333_v28 = vld [vmem:[#allocation6] sm:$0xff]  ;;  %v334_v31 = vld [vmem:[#allocation6 + $0x8] sm:$0xff]  ;;  %v897_v34 = vld [vmem:[#allocation11 + $0x20] sm:$0xff] }
  0x2a   : > { %v337_v1 = vshrl.u32 %v336_v0, 7  ;;  %v340_v2 = vand.u32 127, %v336_v0  ;;  %v349_v10 = vstv %s348_s11  ;;  %v372_v35 = vmul.f32 1.25, %v333_v28  ;;  %v896_v40 = vld [vmem:[#allocation11 + $0x18] sm:$0xff]  ;;  %v895_v46 = vld [vmem:[#allocation11 + $0x10] sm:$0xff]  ;;  %v894_v47 = vld [vmem:[#allocation11 + $0x8] sm:$0xff] }
  0x2b   : > { %v373_v38 = vmul.f32 1.25, %v334_v31  ;;  %v891_v45 = vld [vmem:[#allocation9] sm:$0xff]  ;;  %v893_v48 = vld [vmem:[#allocation11] sm:$0xff] }
  0x2c   : > { %v338_v3 = vadd.s32 8, %v337_v1  ;;  %v341_v4 = vmul.u32 2654435769, %v337_v1  ;;  %v343_v5 = vmul.u32 668265261, %v340_v2 }
  0x2d   : > { %483 = vmatpush.bf16.msra.mxu1 %v899_v22 }
  0x2e   : > { %v342_v6 = vmul.u32 2654435769, %v338_v3  ;;  %v344_v7 = vadd.s32 %v343_v5, %v341_v4 }
  0x30   : > { %v345_v8 = vadd.s32 %v343_v5, %v342_v6  ;;  %v346_v9 = vadd.s32 1, %v344_v7  ;;  %v511_v52 = vadd.s32 2, %v344_v7  ;;  %v1004_v7 = vld [vmem:[%s1351_s4] ss:$0 sm:$0xff] }
  0x31   : > { %484 = vmatpush.bf16.msra.mxu1 %v898_v27 }
  0x32   : > { %v347_v11 = vadd.s32 1, %v345_v8  ;;  %v350_v12 = vxor.u32 %v349_v10, %v346_v9  ;;  %v512_v53 = vadd.s32 2, %v345_v8  ;;  %v515_v54 = vxor.u32 %v511_v52, %v349_v10 }
  0x34   : > { %v351_v13 = vxor.u32 %v349_v10, %v347_v11  ;;  %v352_v14 = vshra.s32 %v350_v12, 16  ;;  %v516_v55 = vxor.u32 %v512_v53, %v349_v10  ;;  %v517_v56 = vshra.s32 %v515_v54, 16 }
  0x35   : > { %485 = vmatpush.bf16.msra.mxu1 %v897_v34 }
  0x36   : > { %v353_v15 = vshra.s32 %v351_v13, 16  ;;  %v354_v16 = vxor.u32 %v352_v14, %v350_v12  ;;  %v518_v57 = vshra.s32 %v516_v55, 16  ;;  %v519_v58 = vxor.u32 %v517_v56, %v515_v54 }
  0x38   : > { %v355_v17 = vxor.u32 %v353_v15, %v351_v13  ;;  %v356_v18 = vmul.u32 2146095405, %v354_v16  ;;  %v520_v59 = vxor.u32 %v518_v57, %v516_v55  ;;  %v521_v60 = vmul.u32 2146095405, %v519_v58 }
  0x39   : > { %486 = vmatpush.bf16.msra.mxu1 %v896_v40 }
  0x3a   : > { %v357_v20 = vmul.u32 2146095405, %v355_v17  ;;  %v358_v21 = vshra.s32 %v356_v18, 15  ;;  %v522_v61 = vmul.u32 2146095405, %v520_v59  ;;  %v523_v62 = vshra.s32 %v521_v60, 15 }
  0x3c   : > { %v359_v23 = vshra.s32 %v357_v20, 15  ;;  %v360_v24 = vxor.u32 %v358_v21, %v356_v18  ;;  %v524_v63 = vshra.s32 %v522_v61, 15  ;;  %v525_v0 = vxor.u32 %v523_v62, %v521_v60 }
  0x3d   : > { %487 = vmatpush.bf16.msra.mxu1 %v895_v46 }
  0x3e   : > { %v361_v25 = vxor.u32 %v359_v23, %v357_v20  ;;  %v362_v26 = vmul.u32 2221497995, %v360_v24  ;;  %v526_v1 = vxor.u32 %v524_v63, %v522_v61  ;;  %v527_v2 = vmul.u32 2221497995, %v525_v0 }
  0x40   : > { %v363_v29 = vmul.u32 2221497995, %v361_v25  ;;  %v364_v30 = vshra.s32 %v362_v26, 16  ;;  %v528_v3 = vmul.u32 2221497995, %v526_v1  ;;  %v529_v4 = vshra.s32 %v527_v2, 16 }
  0x41   : > { %488 = vmatpush.bf16.msra.mxu1 %v894_v47 }
  0x42   : > { %v365_v32 = vshra.s32 %v363_v29, 16  ;;  %v366_v33 = vxor.u32 %v364_v30, %v362_v26  ;;  %v530_v5 = vshra.s32 %v528_v3, 16  ;;  %v531_v8 = vxor.u32 %v529_v4, %v527_v2 }
  0x44   : > { %v367_v36 = vxor.u32 %v365_v32, %v363_v29  ;;  %v368_v37 = vand.u32 8388607, %v366_v33  ;;  %v532_v9 = vxor.u32 %v530_v5, %v528_v3  ;;  %v533_v11 = vand.u32 8388607, %v531_v8 }
  0x45   : > { %489 = vmatpush.bf16.msra.mxu1 %v893_v48 }
  0x46   : > { %v369_v39 = vand.u32 8388607, %v367_v36  ;;  %vm370_vm0 = vcmp.lt.s32.totalorder %v368_v37, 6710886  ;;  %v534_v12 = vand.u32 8388607, %v532_v9 }
  0x47   : > { %v374_v41 = vsel %vm370_vm0, %v372_v35, 0.0  ;;  %vm535_vm3 = vcmp.lt.s32.totalorder %v533_v11, 5368709 }
  0x48   : > { %vm371_vm1 = vcmp.lt.s32.totalorder %v369_v39, 6710886  ;;  %vm536_vm4 = vcmp.lt.s32.totalorder %v534_v12, 5368709 }
  0x49   : > { %v375_v42 = vsel %vm371_vm1, %v373_v38, 0.0 }
  0x4a   : > { %v914_v43 = vpack.c.bf16 %v375_v42, %v374_v41 }
  0x4c   : > { %915 = vst [vmem:[#allocation2] sm:$0xff] %v914_v43  }
  0x53   : > { %v892_v44 = vld [vmem:[#allocation2] sm:$0xff] }
  0x54   : > { %406 = vmatpush.bf16.msra.mxu0 %v892_v44 }
  0x57   : > { %812 = vmatmul.msk.bf16.vlgmr.msra.gmra.mxu0 %vm395_vm2, %v891_v45 }
  0xd4   : > { %v408_v49 = vpop.f32.mrf.mxu0 }
  0xdc   : > { %v410_v50 = vpop.f32.mrf.mxu0 }
  0xdd   : > { %v413_v51 = vpack.c.bf16 %v410_v50, %v408_v49 }
  0xdf   : > { %490 = vmatmul.bf16.vlgmr.msra.gmra.mxu1 %v413_v51 }
 0x15c   : > { %v491_v6 = vpop.f32.mrf.mxu1 }
 0x15d   : > { %v492_v10 = vadd.f32 %v1004_v7, %v491_v6 }
 0x15f   : > { %v537_v14 = vmul.f32 1.5625, %v492_v10 }
 0x161   : > { %v539_v17 = vsel %vm535_vm3, %v537_v14, 0.0 }
 0x164   : > { %v493_v13 = vpop.f32.mrf.mxu1 }
 0x165   : > { %v494_v15 = vadd.f32 %v1004_v7, %v493_v13 }
 0x167   : > { %v538_v16 = vmul.f32 1.5625, %v494_v15 }
 0x169   : > { %v540_v18 = vsel %vm536_vm4, %v538_v16, 0.0 }
 0x16a   : > { %v919_v19 = vpack.c.bf16 %v540_v18, %v539_v17 }
 0x16c   : > { %920 = vst [vmem:[#allocation3] sm:$0xff] %v919_v19  }
 0x16d PF: > { %p845_p8 = scmp.ne.s32.totalorder %s1184_s26, 1 }
 0x16f   : > { %552 = sbr.rel (%p845_p8) target bundleno = 649 (0x289), region = 72 }
 0x174   : > { %v902_v20 = vld [vmem:[#allocation3] sm:$0xff]  ;;  %v910_v21 = vld [vmem:[#allocation12 + $0x38] sm:$0xff]  ;;  %vm568_vm5 = vcmask 130048   ;;  %v909_v23 = vld [vmem:[#allocation12 + $0x30] sm:$0xff] }
 0x175   : > { %v901_v22 = vld [vmem:[#allocation9] sm:$0xff]  ;;  %579 = vmatpush.bf16.msra.mxu0 %v902_v20  ;;  %655 = vmatpush.bf16.msra.mxu1 %v910_v21  ;;  %v908_v24 = vld [vmem:[#allocation12 + $0x28] sm:$0xff]  ;;  %v907_v25 = vld [vmem:[#allocation12 + $0x20] sm:$0xff] }
 0x176   : > { %v906_v26 = vld [vmem:[#allocation12 + $0x18] sm:$0xff]  ;;  %v905_v27 = vld [vmem:[#allocation12 + $0x10] sm:$0xff]  ;;  %v904_v28 = vld [vmem:[#allocation12 + $0x8] sm:$0xff] }
 0x177   : > { %v903_v29 = vld [vmem:[#allocation12] sm:$0xff]  ;;  %v1005_v33 = vld [vmem:[%s1353_s6] ss:$0 sm:$0xff] }
 0x178   : > { %854 = vmatmul.msk.bf16.vlgmr.msra.gmra.mxu0 %vm568_vm5, %v901_v22 }
 0x179   : > { %656 = vmatpush.bf16.msra.mxu1 %v909_v23 }
 0x17d   : > { %657 = vmatpush.bf16.msra.mxu1 %v908_v24 }
 0x181   : > { %658 = vmatpush.bf16.msra.mxu1 %v907_v25 }
 0x185   : > { %659 = vmatpush.bf16.msra.mxu1 %v906_v26 }
 0x189   : > { %660 = vmatpush.bf16.msra.mxu1 %v905_v27 }
 0x18d   : > { %661 = vmatpush.bf16.msra.mxu1 %v904_v28 }
 0x191   : > { %662 = vmatpush.bf16.msra.mxu1 %v903_v29 }
 0x1f5   : > { %v581_v30 = vpop.f32.mrf.mxu0 }
 0x1fd   : > { %v583_v31 = vpop.f32.mrf.mxu0 }
 0x1fe   : > { %v586_v32 = vpack.c.bf16 %v583_v31, %v581_v30 }
 0x200   : > { %663 = vmatmul.bf16.vlgmr.msra.gmra.mxu1 %v586_v32 }
 0x27d   : > { %v664_v34 = vpop.f32.mrf.mxu1 }
 0x27e   : > { %v665_v35 = vadd.f32 %v1005_v33, %v664_v34 }
 0x280   : > { %669 = vst [vmem:[#allocation14] sm:$0xff] %v665_v35 }
 0x285   : > { %v666_v36 = vpop.f32.mrf.mxu1 }
 0x286   : > { %v667_v37 = vadd.f32 %v1005_v33, %v666_v36 }
 0x288   : > { %670 = vst [vmem:[#allocation14 + $0x8] sm:$0xff] %v667_v37 }
 0x289 PF: > { %p966_p9 = scmp.eq.s32.totalorder %s791_s8, 1  ;;  %s687_s22 = sshll.u32 %s1354_s7, 4  ;;  %s688_s22 = int_to_ptr.hbm [resolvable:$true] %s687_s22 }
 0x28a   : > { %s1202_s23 = smov [#allocation14]   ;;  %s1203_s25 = smov 128  }
 0x28b   : > { %s685_s24 = sshll.u32 %s1202_s23, 4  ;;  %s1204_s0 = smov 8   ;;  %s686_s24 = int_to_ptr.vmem [resolvable:$true] %s685_s24 }
 0x28c   : > { %938 = dma.vmem_to_hbm [thread:$0]  (%p966_p9), %s686_s24, 256, %s688_s22, [#allocation8], %s1203_s25, %s1203_s25, %s1204_s0  }
 0x28d PF: > { %p967_p10 = scmp.ge.s32.totalorder %s1192_s28, 2  ;;  %s1358_s29 = sadd.s32 4294967294, %s1192_s28  }
 0x28e   : > { %p968_p11 = scmp.eq.s32.totalorder %s1358_s29, 1 }
 0x290   : > { %p955_p12 = pnand %p968_p11, %p967_p10 }
 0x292   : > { %p956_p13 = pneg %p955_p12 }
 0x294   : > { %1179 = dma.done.wait (%p956_p13), [#allocation8], 256  }
 0x295   : > { %1181 = vsyncadd (%p956_p13), [#allocation8], 4294967040  ;;  %s24_s28 = sadd.s32 1, %s1192_s28   ;;  %s1359_s26 = smov %s1188_s27 }
 0x296   : > { %p21_p0 = scmp.ge.s32.totalorder %s24_s28, 4   ;;  %s1360_s27 = smov %s1362_s15 }
 0x298   :  { %23 = sbr.rel (!%p21_p0) target bundleno = 8 (0x8), region = 107 }
 0x29d   :  { %709 = vsyncpa [#allocation7], 1 }
 0x29e   :  { %711 = vsyncpa [#allocation7 + $0x1], 1 }
 0x29f   :  { %712 = vsyncpa [#allocation10], 1 }
 0x2a0   :  { %713 = vsyncpa [#allocation13], 1 }
 0x2a1   :  { %714 = vsyncpa [#allocation8], 1 }
 0x2a2   :  { %716 = vsyncpa [#allocation8 + $0x1], 1 }

</bundles_post_ra>
